<compile_context>
chip_gen: v7x
topology: tpu7x:2x2x1
jax: 0.10.0
libtpu: 0.0.40
codegen_flags: <defaults>
</compile_context>

<pallas_src>
import functools

import jax
import jax.numpy as jnp
from jax.experimental import pallas as pl
from jax.experimental.pallas import tpu as pltpu

HIGHEST = jax.lax.Precision.HIGHEST  # used only by the pure-JAX reference


# ------------------------------ small helpers --------------------------------

def _bytes(shape, dtype):
    n = 1
    for s in shape:
        n *= int(s)
    return n * jnp.dtype(dtype).itemsize


def _compiler_params(block_bytes):
    """Parallel grid + explicit VMEM limit (2x blocks for double-buffering plus
    headroom for in-kernel temporaries / internal scratch)."""
    limit = int(min(max(2 * block_bytes + (8 << 20), 16 << 20), 100 << 20))
    return pltpu.CompilerParams(dimension_semantics=("parallel",),
                                vmem_limit_bytes=limit)


def _pick_block_rows(m, target=512):
    """Largest multiple-of-8 divisor of m that is <= target, preferring a grid of
    >= 2 steps (keeps both TensorCores busy on v7x); falls back to m.
    # TODO(synk): switch to pl.cdiv + padded/masked remainder tiles for row counts
    # with no good divisor instead of falling back to one giant block.
    """
    cap = min(target, m // 2) if m >= 16 else min(target, m)
    for bm in range(cap, 7, -1):
        if m % bm == 0 and bm % 8 == 0:
            return bm
    for bm in range(min(target, m), 7, -1):
        if m % bm == 0 and bm % 8 == 0:
            return bm
    return m


def _pick_heads_per_block(num_head, seq, dh, mask_itemsize, budget=12 << 20):
    """Largest divisor of num_head whose per-step attention working set fits the
    VMEM budget (double-buffered masks + f32 score/exp temporaries + q/k/v/out)."""
    per_head = (2 * 2 * seq * seq * mask_itemsize     # adj/com masks, 2 buffers
                + 5 * seq * seq * 4                   # s, e, 2x num, p (f32)
                + 4 * 2 * seq * dh * 2)               # q/k/v/out bf16, 2 buffers
    g = num_head
    while g > 1 and g * per_head > budget:
        g -= 1
        while g > 1 and num_head % g:
            g -= 1
    return max(g, 1)


# --------------------------- fused Q/K/V projections --------------------------

def _qkv_kernel(x_ref, wq_ref, wk_ref, wv_ref, bq_ref, bk_ref, bv_ref,
                q_ref, k_ref, v_ref):
    x = x_ref[...]                                       # bf16 [bm, D]

    def proj(w_ref, b_ref):
        return (jnp.dot(x, w_ref[...], preferred_element_type=jnp.float32)
                + b_ref[...])

    q_ref[...] = proj(wq_ref, bq_ref).astype(q_ref.dtype)
    k_ref[...] = proj(wk_ref, bk_ref).astype(k_ref.dtype)
    v_ref[...] = proj(wv_ref, bv_ref).astype(v_ref.dtype)


def fused_qkv(x2d, wq, wk, wv, bq, bk, bv, block_m):
    """x2d: [M, D] bf16; w*: [D, D] bf16; b*: [D] f32 -> (Q, K, V) each [M, D] bf16."""
    M, D = x2d.shape
    row_spec = pl.BlockSpec((block_m, D), lambda i: (i, 0))
    w_spec = pl.BlockSpec((D, D), lambda i: (0, 0))
    b_spec = pl.BlockSpec((1, D), lambda i: (0, 0))
    # TODO(synk): mark the grid-invariant weight/bias blocks with
    # pipeline_mode=pl.Buffered(1) (single-buffering) once validated on the target
    # jax build; it halves resident weight VMEM at large D.
    block_bytes = (4 * _bytes((block_m, D), jnp.bfloat16)        # x + 3 outputs
                   + 3 * _bytes((D, D), jnp.bfloat16)
                   + 3 * _bytes((1, D), jnp.float32))
    out = jax.ShapeDtypeStruct((M, D), jnp.bfloat16)
    return pl.pallas_call(
        _qkv_kernel,
        grid=(M // block_m,),
        in_specs=[row_spec, w_spec, w_spec, w_spec, b_spec, b_spec, b_spec],
        out_specs=(row_spec, row_spec, row_spec),
        out_shape=(out, out, out),
        compiler_params=_compiler_params(block_bytes),
    )(x2d, wq, wk, wv, bq.reshape(1, D), bk.reshape(1, D), bv.reshape(1, D))


# ---------------------- lattice attention (head-grouped) ---------------------

def _attn_kernel(q_ref, k_ref, v_ref, adj_ref, com_ref, adjm_ref, comm_ref,
                 o_ref):
    q = q_ref[...]                           # [G, L, dh] bf16 (pre-scaled by 1/sqrt(dh))
    k = k_ref[...]                           # [G, L, dh] bf16
    kf = k.astype(jnp.float32)

    # One shared LxL MXU matmul with f32 accumulation.
    s = jnp.einsum("hqd,hkd->hqk", q, k,
                   preferred_element_type=jnp.float32)            # [G, L, L]
    # Single LxL exp shared by both relation-shifted softmaxes:
    #   softmax((Q+r)(K+r)^T * scale) == softmax(s + scale*(K.r))
    # because the per-query and constant terms cancel inside the softmax.
    e = jnp.exp(s - jnp.max(s, axis=-1, keepdims=True))           # [G, L, L]

    def rel_softmax(rel_ref):
        b = jnp.sum(kf * rel_ref[...], axis=-1)                   # [G, L] per-key bias
        f = jnp.exp(b - jnp.max(b, axis=-1, keepdims=True))       # per-key exp factor
        num = e * f[:, None, :]
        return num * pl.reciprocal(jnp.sum(num, axis=-1, keepdims=True),
                                   approx=True)

    p = (rel_softmax(adj_ref) * adjm_ref[...].astype(jnp.float32)
         + rel_softmax(com_ref) * comm_ref[...].astype(jnp.float32))
    o_ref[...] = jnp.einsum("hqk,hkd->hqd", p.astype(v_ref.dtype), v_ref[...],
                            preferred_element_type=jnp.float32).astype(o_ref.dtype)


def lattice_attention(Q, K, V, adj_mask, com_mask, adj_rel, com_rel,
                      heads_per_block):
    """Q,K,V: [BH, L, dh] bf16 (Q pre-scaled); masks: [BH, L, L] any narrow dtype;
    rels: [1, dh] f32 (pre-scaled).  Returns context [BH, L, dh] bf16."""
    BH, L, dh = Q.shape
    G = heads_per_block
    qkv_spec = pl.BlockSpec((G, L, dh), lambda i: (i, 0, 0))
    mask_spec = pl.BlockSpec((G, L, L), lambda i: (i, 0, 0))
    rel_spec = pl.BlockSpec((1, dh), lambda i: (0, 0))
    block_bytes = (4 * _bytes((G, L, dh), jnp.bfloat16)
                   + 2 * _bytes((G, L, L), adj_mask.dtype)
                   + 5 * _bytes((G, L, L), jnp.float32)           # in-kernel temporaries
                   + 2 * _bytes((1, dh), jnp.float32))
    # TODO(synk): for realistic L (>= 512) add a KV-tile grid axis with an
    # online-softmax accumulator so the [G, L, L] scores / masks never fully
    # materialize in VMEM (required to fit v7x's 64 MiB).
    # TODO(synk): lane-dense [L, D] I/O (in-kernel head split) is deferred: the
    # torch .view head/token mixing makes that an awkward Mosaic relayout at
    # dh < 128, and the [L, dh] context store is O(L*dh) next to the O(L^2) mask
    # traffic that dominates this kernel.
    return pl.pallas_call(
        _attn_kernel,
        grid=(BH // G,),
        in_specs=[qkv_spec, qkv_spec, qkv_spec, rel_spec, rel_spec,
                  mask_spec, mask_spec],
        out_specs=qkv_spec,
        out_shape=jax.ShapeDtypeStruct((BH, L, dh), jnp.bfloat16),
        compiler_params=_compiler_params(block_bytes),
    )(Q, K, V, adj_rel, com_rel, adj_mask, com_mask)


# ------------------ output projection + residual + LayerNorm -----------------

def _proj_res_ln_kernel(x_ref, res_ref, w_ref, b_ref, g_ref, beta_ref, o_ref,
                        *, eps):
    y = (jnp.dot(x_ref[...], w_ref[...],
                 preferred_element_type=jnp.float32) + b_ref[...])
    z = y + res_ref[...]
    mu = jnp.mean(z, axis=-1, keepdims=True)
    var = jnp.mean(jnp.square(z - mu), axis=-1, keepdims=True)
    o_ref[...] = ((z - mu) * jax.lax.rsqrt(var + eps) * g_ref[...]
                  + beta_ref[...]).astype(o_ref.dtype)


def proj_residual_ln(x2d, res2d, w, b, gamma, beta, block_m, out_dtype,
                     eps=1e-5):
    M, Din = x2d.shape
    Dout = w.shape[1]
    block_bytes = (_bytes((block_m, Din), x2d.dtype)
                   + _bytes((block_m, Dout), res2d.dtype)
                   + _bytes((block_m, Dout), out_dtype)
                   + _bytes((Din, Dout), w.dtype)
                   + 3 * _bytes((1, Dout), jnp.float32))
    return pl.pallas_call(
        functools.partial(_proj_res_ln_kernel, eps=eps),
        grid=(M // block_m,),
        in_specs=[pl.BlockSpec((block_m, Din), lambda i: (i, 0)),
                  pl.BlockSpec((block_m, Dout), lambda i: (i, 0)),
                  pl.BlockSpec((Din, Dout), lambda i: (0, 0)),
                  pl.BlockSpec((1, Dout), lambda i: (0, 0)),
                  pl.BlockSpec((1, Dout), lambda i: (0, 0)),
                  pl.BlockSpec((1, Dout), lambda i: (0, 0))],
        out_specs=pl.BlockSpec((block_m, Dout), lambda i: (i, 0)),
        out_shape=jax.ShapeDtypeStruct((M, Dout), out_dtype),
        compiler_params=_compiler_params(block_bytes),
    )(x2d, res2d, w, b.reshape(1, Dout), gamma.reshape(1, Dout),
      beta.reshape(1, Dout))


# ---------------- fused FFN: w1 + ReLU + w2 + residual + LayerNorm -----------

def _ffn_kernel(x_ref, w1_ref, b1_ref, w2_ref, b2_ref, g_ref, beta_ref, o_ref,
                *, eps):
    x = x_ref[...]                                            # bf16 [bm, D]
    h = jnp.maximum(jnp.dot(x, w1_ref[...],
                            preferred_element_type=jnp.float32) + b1_ref[...],
                    0.0)
    y = (jnp.dot(h.astype(jnp.bfloat16), w2_ref[...],
                 preferred_element_type=jnp.float32) + b2_ref[...])
    z = y + x.astype(jnp.float32)
    mu = jnp.mean(z, axis=-1, keepdims=True)
    var = jnp.mean(jnp.square(z - mu), axis=-1, keepdims=True)
    o_ref[...] = ((z - mu) * jax.lax.rsqrt(var + eps) * g_ref[...]
                  + beta_ref[...]).astype(o_ref.dtype)


def ffn_residual_ln(x2d, w1, b1, w2, b2, gamma, beta, block_m, eps=1e-5):
    M, D = x2d.shape
    Hdn = w1.shape[1]
    block_bytes = (_bytes((block_m, D), x2d.dtype)
                   + _bytes((block_m, D), jnp.float32)
                   + _bytes((block_m, Hdn), jnp.float32)          # hidden activation
                   + _bytes((D, Hdn), w1.dtype) + _bytes((Hdn, D), w2.dtype)
                   + _bytes((1, Hdn), jnp.float32)
                   + 3 * _bytes((1, D), jnp.float32))
    # TODO(synk): for very large D/Hdn on v7x (64 MiB VMEM) tile Hdn with a
    # reduction grid axis + f32 accumulator instead of keeping both weights fully
    # resident (bf16 weights already halve the residency).
    return pl.pallas_call(
        functools.partial(_ffn_kernel, eps=eps),
        grid=(M // block_m,),
        in_specs=[pl.BlockSpec((block_m, D), lambda i: (i, 0)),
                  pl.BlockSpec((D, Hdn), lambda i: (0, 0)),
                  pl.BlockSpec((1, Hdn), lambda i: (0, 0)),
                  pl.BlockSpec((Hdn, D), lambda i: (0, 0)),
                  pl.BlockSpec((1, D), lambda i: (0, 0)),
                  pl.BlockSpec((1, D), lambda i: (0, 0)),
                  pl.BlockSpec((1, D), lambda i: (0, 0))],
        out_specs=pl.BlockSpec((block_m, D), lambda i: (i, 0)),
        out_shape=jax.ShapeDtypeStruct((M, D), jnp.float32),
        compiler_params=_compiler_params(block_bytes),
    )(x2d, w1, b1.reshape(1, Hdn), w2, b2.reshape(1, D),
      gamma.reshape(1, D), beta.reshape(1, D))


# ------------------------------ Encoder forward ------------------------------

def encoder_forward(params, x, adj_mask, com_mask, lattice_rel):
    """x: [B, L, D] f32; masks: [B*H, L, L] (any dtype; int8/bool recommended);
    lattice_rel: two [*, dh] relation vectors."""
    B, L, D = x.shape
    H = params["num_head"]
    dh = D // H
    M = B * L
    scale = float(dh) ** (-0.5)
    bm = _pick_block_rows(M)

    x2d = x.reshape(M, D)                      # f32 residual for the proj kernel
    x2d_bf = x2d.astype(jnp.bfloat16)          # bf16 matmul operand

    # Weight casts (one-time per call here; done once at parameter-load time in a
    # real deployment).  `scale` is folded into the Q projection so the attention
    # kernel never multiplies by it.
    wq = (params["wq"] * scale).astype(jnp.bfloat16)
    bq = params["bq"] * scale
    wk = params["wk"].astype(jnp.bfloat16)
    wv = params["wv"].astype(jnp.bfloat16)
    wo = params["wo"].astype(jnp.bfloat16)
    w1 = params["w1"].astype(jnp.bfloat16)
    w2 = params["w2"].astype(jnp.bfloat16)

    q2d, k2d, v2d = fused_qkv(x2d_bf, wq, wk, wv,
                              bq, params["bk"], params["bv"], bm)

    # torch .view(B*H, -1, dh) semantics: contiguous row-major reshape (no head
    # transpose) -> free reshapes between pallas_calls (no strided column slices).
    Q = q2d.reshape(B * H, L, dh)
    K = k2d.reshape(B * H, L, dh)
    V = v2d.reshape(B * H, L, dh)

    # Pre-scaled relation vectors: only the per-key bias scale*(K.r) survives the
    # softmax (see _attn_kernel).
    adj_rel = jnp.asarray(lattice_rel[0], jnp.float32).reshape(1, dh) * scale
    com_rel = jnp.asarray(lattice_rel[1], jnp.float32).reshape(1, dh) * scale

    G = _pick_heads_per_block(H, L, dh, jnp.dtype(adj_mask.dtype).itemsize)
    ctx = lattice_attention(Q, K, V, adj_mask, com_mask, adj_rel, com_rel, G)
    ctx2d = ctx.reshape(M, D)                  # free reshape, bf16

    # TODO(synk): dropout is identity here (p=0 / eval mode), matching nn.Dropout
    # at inference.
    out = proj_residual_ln(ctx2d, x2d, wo, params["bo"],
                           params["ln1_g"], params["ln1_b"], bm,
                           out_dtype=jnp.bfloat16)

    y = ffn_residual_ln(out, w1, params["b1"], w2, params["b2"],
                        params["ln2_g"], params["ln2_b"], bm)
    return y.reshape(B, L, D)


# ------------------------------ JAX reference --------------------------------

def encoder_reference(params, x, adj_mask, com_mask, lattice_rel):
    B, L, D = x.shape
    H = params["num_head"]
    dh = D // H

    def lin(v, w, b):
        return jnp.dot(v, w, precision=HIGHEST) + b

    Q = lin(x, params["wq"], params["bq"]).reshape(B * H, L, dh)
    K = lin(x, params["wk"], params["bk"]).reshape(B * H, L, dh)
    V = lin(x, params["wv"], params["bv"]).reshape(B * H, L, dh)
    scale = float(dh) ** (-0.5)

    adj = lattice_rel[0].reshape(1, 1, dh)
    com = lattice_rel[1].reshape(1, 1, dh)
    att_adj = jnp.einsum("bqd,bkd->bqk", Q + adj, K + adj,
                         precision=HIGHEST) * scale
    att_com = jnp.einsum("bqd,bkd->bqk", Q + com, K + com,
                         precision=HIGHEST) * scale
    mask_att = (jax.nn.softmax(att_adj, axis=-1) * adj_mask
                + jax.nn.softmax(att_com, axis=-1) * com_mask)
    ctx = jnp.einsum("bqk,bkd->bqd", mask_att, V,
                     precision=HIGHEST).reshape(B, L, D)

    def ln(z, g, b, eps=1e-5):
        mu = jnp.mean(z, axis=-1, keepdims=True)
        var = jnp.mean(jnp.square(z - mu), axis=-1, keepdims=True)
        return (z - mu) * jax.lax.rsqrt(var + eps) * g + b

    out = lin(ctx, params["wo"], params["bo"]) + x
    out = ln(out, params["ln1_g"], params["ln1_b"])
    h = jax.nn.relu(lin(out, params["w1"], params["b1"]))
    y = lin(h, params["w2"], params["b2"]) + out
    return ln(y, params["ln2_g"], params["ln2_b"])


# ---------------------------------- main --------------------------------------

def make_params(key, dim_model, num_head, hidden):
    ks = jax.random.split(key, 12)

    def w_init(k, din, dout):
        return (jax.random.normal(k, (din, dout), jnp.float32)
                * jnp.sqrt(2.0 / (din + dout)))

    return {
        "num_head": num_head,
        "wq": w_init(ks[0], dim_model, dim_model),
        "bq": jax.random.normal(ks[1], (dim_model,), jnp.float32) * 0.02,
        "wk": w_init(ks[2], dim_model, dim_model),
        "bk": jax.random.normal(ks[3], (dim_model,), jnp.float32) * 0.02,
        "wv": w_init(ks[4], dim_model, dim_model),
        "bv": jax.random.normal(ks[5], (dim_model,), jnp.float32) * 0.02,
        "wo": w_init(ks[6], dim_model, dim_model),
        "bo": jax.random.normal(ks[7], (dim_model,), jnp.float32) * 0.02,
        "ln1_g": jnp.ones((dim_model,), jnp.float32),
        "ln1_b": jnp.zeros((dim_model,), jnp.float32),
        "w1": w_init(ks[8], dim_model, hidden),
        "b1": jax.random.normal(ks[9], (hidden,), jnp.float32) * 0.02,
        "w2": w_init(ks[10], hidden, dim_model),
        "b2": jax.random.normal(ks[11], (dim_model,), jnp.float32) * 0.02,
        "ln2_g": jnp.ones((dim_model,), jnp.float32),
        "ln2_b": jnp.zeros((dim_model,), jnp.float32),
    }


if __name__ == "__main__":
    B, L, dim_model, num_head, hidden = 2, 16, 32, 4, 64
    dh = dim_model // num_head
    BH = B * num_head

    key = jax.random.PRNGKey(0)
    k_x, k_p, k_m1, k_m2, k_r1, k_r2 = jax.random.split(key, 6)

    x = jax.random.normal(k_x, (B, L, dim_model), jnp.float32)
    adj_mask = jax.random.bernoulli(k_m1, 0.5, (BH, L, L)).astype(jnp.float32)
    com_mask = jax.random.bernoulli(k_m2, 0.5, (BH, L, L)).astype(jnp.float32)
    lattice_rel = [
        jax.random.normal(k_r1, (1, 1, dh), jnp.float32),
        jax.random.normal(k_r2, (1, 1, dh), jnp.float32),
    ]
    params = make_params(k_p, dim_model, num_head, hidden)

    # Kernel path consumes int8 masks (exact for the 0/1 adjacency / community
    # matrices, 4x less HBM traffic than f32); reference uses the f32 originals.
    out = encoder_forward(params, x,
                          adj_mask.astype(jnp.int8), com_mask.astype(jnp.int8),
                          lattice_rel)
    out = jax.block_until_ready(out)

    ref = encoder_reference(params, x, adj_mask, com_mask, lattice_rel)
    assert out.shape == (B, L, dim_model)
    max_err = float(jnp.max(jnp.abs(out - ref)))
    mean_err = float(jnp.mean(jnp.abs(out - ref)))
    # bf16 matmul operands (f32 accumulation) + approx-reciprocal softmax vs. the
    # full-f32 HIGHEST-precision reference: expected max-abs error is a few 1e-2
    # at these shapes, so the elementwise check uses a correspondingly wider
    # tolerance, backed by a tight mean-error check.
    assert jnp.allclose(out, ref, rtol=1e-1, atol=1e-1), (max_err, mean_err)
    assert mean_err < 3e-2, (max_err, mean_err)
    print("KERNEL_OK")
</pallas_src>

<mosaic_0001>
module attributes {stable_mosaic.version = 11 : i64} {
  func.func @_qkv_kernel(%arg0: i32, %arg1: memref<16x32xbf16, #tpu.memory_space<vmem>>, %arg2: memref<32x32xbf16, #tpu.memory_space<vmem>>, %arg3: memref<32x32xbf16, #tpu.memory_space<vmem>>, %arg4: memref<32x32xbf16, #tpu.memory_space<vmem>>, %arg5: memref<1x32xf32, #tpu.memory_space<vmem>>, %arg6: memref<1x32xf32, #tpu.memory_space<vmem>>, %arg7: memref<1x32xf32, #tpu.memory_space<vmem>>, %arg8: memref<16x32xbf16, #tpu.memory_space<vmem>>, %arg9: memref<16x32xbf16, #tpu.memory_space<vmem>>, %arg10: memref<16x32xbf16, #tpu.memory_space<vmem>>) attributes {dimension_semantics = [#tpu.dimension_semantics<parallel>], iteration_bounds = array<i64: 2>, scalar_prefetch = 0 : i64, scratch_operands = 0 : i64, tpu.core_type = #tpu.core_type<tc>, window_params = [{transform_indices = @transform_0, window_bounds = array<i64: 16, 32>}, {pipeline_mode = #tpu.pipeline_mode<synchronous>, transform_indices = @transform_1, window_bounds = array<i64: 32, 32>}, {pipeline_mode = #tpu.pipeline_mode<synchronous>, transform_indices = @transform_2, window_bounds = array<i64: 32, 32>}, {pipeline_mode = #tpu.pipeline_mode<synchronous>, transform_indices = @transform_3, window_bounds = array<i64: 32, 32>}, {pipeline_mode = #tpu.pipeline_mode<synchronous>, transform_indices = @transform_4, window_bounds = array<i64: 1, 32>}, {pipeline_mode = #tpu.pipeline_mode<synchronous>, transform_indices = @transform_5, window_bounds = array<i64: 1, 32>}, {pipeline_mode = #tpu.pipeline_mode<synchronous>, transform_indices = @transform_6, window_bounds = array<i64: 1, 32>}, {transform_indices = @transform_7, window_bounds = array<i64: 16, 32>}, {transform_indices = @transform_8, window_bounds = array<i64: 16, 32>}, {transform_indices = @transform_9, window_bounds = array<i64: 16, 32>}]} {
    %c0 = arith.constant 0 : index
    %c0_0 = arith.constant 0 : index
    %0 = vector.load %arg1[%c0, %c0_0] : memref<16x32xbf16, #tpu.memory_space<vmem>>, vector<16x32xbf16>
    %c0_1 = arith.constant 0 : index
    %c0_2 = arith.constant 0 : index
    %1 = vector.load %arg2[%c0_1, %c0_2] : memref<32x32xbf16, #tpu.memory_space<vmem>>, vector<32x32xbf16>
    %cst = arith.constant dense<0.000000e+00> : vector<16x32xf32>
    %2 = tpu.matmul %0, %1, %cst {dimension_numbers = #tpu.dot_dimension_numbers<[1], [0], [0], [1], [0, 0, 1, 1], [], []>} : vector<16x32xbf16>, vector<32x32xbf16>, vector<16x32xf32> -> vector<16x32xf32>
    %c0_3 = arith.constant 0 : index
    %c0_4 = arith.constant 0 : index
    %3 = vector.load %arg5[%c0_3, %c0_4] : memref<1x32xf32, #tpu.memory_space<vmem>>, vector<1x32xf32>
    %4 = vector.broadcast %3 : vector<1x32xf32> to vector<16x32xf32>
    %5 = arith.addf %2, %4 : vector<16x32xf32>
    %6 = arith.truncf %5 : vector<16x32xf32> to vector<16x32xbf16>
    %c0_5 = arith.constant 0 : index
    %c0_6 = arith.constant 0 : index
    %7 = vector.load %arg8[%c0_5, %c0_6] : memref<16x32xbf16, #tpu.memory_space<vmem>>, vector<16x32xbf16>
    tpu.vector_store %arg8[%c0_5, %c0_6], %6 {strides = array<i32>} : memref<16x32xbf16, #tpu.memory_space<vmem>>, vector<16x32xbf16>,
    %c0_7 = arith.constant 0 : index
    %c0_8 = arith.constant 0 : index
    %8 = vector.load %arg3[%c0_7, %c0_8] : memref<32x32xbf16, #tpu.memory_space<vmem>>, vector<32x32xbf16>
    %cst_9 = arith.constant dense<0.000000e+00> : vector<16x32xf32>
    %9 = tpu.matmul %0, %8, %cst_9 {dimension_numbers = #tpu.dot_dimension_numbers<[1], [0], [0], [1], [0, 0, 1, 1], [], []>} : vector<16x32xbf16>, vector<32x32xbf16>, vector<16x32xf32> -> vector<16x32xf32>
    %c0_10 = arith.constant 0 : index
    %c0_11 = arith.constant 0 : index
    %10 = vector.load %arg6[%c0_10, %c0_11] : memref<1x32xf32, #tpu.memory_space<vmem>>, vector<1x32xf32>
    %11 = vector.broadcast %10 : vector<1x32xf32> to vector<16x32xf32>
    %12 = arith.addf %9, %11 : vector<16x32xf32>
    %13 = arith.truncf %12 : vector<16x32xf32> to vector<16x32xbf16>
    %c0_12 = arith.constant 0 : index
    %c0_13 = arith.constant 0 : index
    %14 = vector.load %arg9[%c0_12, %c0_13] : memref<16x32xbf16, #tpu.memory_space<vmem>>, vector<16x32xbf16>
    tpu.vector_store %arg9[%c0_12, %c0_13], %13 {strides = array<i32>} : memref<16x32xbf16, #tpu.memory_space<vmem>>, vector<16x32xbf16>,
    %c0_14 = arith.constant 0 : index
    %c0_15 = arith.constant 0 : index
    %15 = vector.load %arg4[%c0_14, %c0_15] : memref<32x32xbf16, #tpu.memory_space<vmem>>, vector<32x32xbf16>
    %cst_16 = arith.constant dense<0.000000e+00> : vector<16x32xf32>
    %16 = tpu.matmul %0, %15, %cst_16 {dimension_numbers = #tpu.dot_dimension_numbers<[1], [0], [0], [1], [0, 0, 1, 1], [], []>} : vector<16x32xbf16>, vector<32x32xbf16>, vector<16x32xf32> -> vector<16x32xf32>
    %c0_17 = arith.constant 0 : index
    %c0_18 = arith.constant 0 : index
    %17 = vector.load %arg7[%c0_17, %c0_18] : memref<1x32xf32, #tpu.memory_space<vmem>>, vector<1x32xf32>
    %18 = vector.broadcast %17 : vector<1x32xf32> to vector<16x32xf32>
    %19 = arith.addf %16, %18 : vector<16x32xf32>
    %20 = arith.truncf %19 : vector<16x32xf32> to vector<16x32xbf16>
    %c0_19 = arith.constant 0 : index
    %c0_20 = arith.constant 0 : index
    %21 = vector.load %arg10[%c0_19, %c0_20] : memref<16x32xbf16, #tpu.memory_space<vmem>>, vector<16x32xbf16>
    tpu.vector_store %arg10[%c0_19, %c0_20], %20 {strides = array<i32>} : memref<16x32xbf16, #tpu.memory_space<vmem>>, vector<16x32xbf16>,
    return
  }
  func.func @transform_0(%arg0: i32) -> (i32, i32) {
    %c0_i32 = arith.constant 0 : i32
    %c0_i32_0 = arith.constant 0 : i32
    return %arg0, %c0_i32 : i32, i32
  }
  func.func @transform_1(%arg0: i32) -> (i32, i32) {
    %c0_i32 = arith.constant 0 : i32
    %c0_i32_0 = arith.constant 0 : i32
    %c0_i32_1 = arith.constant 0 : i32
    return %c0_i32, %c0_i32_0 : i32, i32
  }
  func.func @transform_2(%arg0: i32) -> (i32, i32) {
    %c0_i32 = arith.constant 0 : i32
    %c0_i32_0 = arith.constant 0 : i32
    %c0_i32_1 = arith.constant 0 : i32
    return %c0_i32, %c0_i32_0 : i32, i32
  }
  func.func @transform_3(%arg0: i32) -> (i32, i32) {
    %c0_i32 = arith.constant 0 : i32
    %c0_i32_0 = arith.constant 0 : i32
    %c0_i32_1 = arith.constant 0 : i32
    return %c0_i32, %c0_i32_0 : i32, i32
  }
  func.func @transform_4(%arg0: i32) -> (i32, i32) {
    %c0_i32 = arith.constant 0 : i32
    %c0_i32_0 = arith.constant 0 : i32
    %c0_i32_1 = arith.constant 0 : i32
    return %c0_i32, %c0_i32_0 : i32, i32
  }
  func.func @transform_5(%arg0: i32) -> (i32, i32) {
    %c0_i32 = arith.constant 0 : i32
    %c0_i32_0 = arith.constant 0 : i32
    %c0_i32_1 = arith.constant 0 : i32
    return %c0_i32, %c0_i32_0 : i32, i32
  }
  func.func @transform_6(%arg0: i32) -> (i32, i32) {
    %c0_i32 = arith.constant 0 : i32
    %c0_i32_0 = arith.constant 0 : i32
    %c0_i32_1 = arith.constant 0 : i32
    return %c0_i32, %c0_i32_0 : i32, i32
  }
  func.func @transform_7(%arg0: i32) -> (i32, i32) {
    %c0_i32 = arith.constant 0 : i32
    %c0_i32_0 = arith.constant 0 : i32
    return %arg0, %c0_i32 : i32, i32
  }
  func.func @transform_8(%arg0: i32) -> (i32, i32) {
    %c0_i32 = arith.constant 0 : i32
    %c0_i32_0 = arith.constant 0 : i32
    return %arg0, %c0_i32 : i32, i32
  }
  func.func @transform_9(%arg0: i32) -> (i32, i32) {
    %c0_i32 = arith.constant 0 : i32
    %c0_i32_0 = arith.constant 0 : i32
    return %arg0, %c0_i32 : i32, i32
  }
}

</mosaic_0001>

<bundles_post_ra>
// kernel: tpu_custom_call.1
= control target key start
LH: loop header
LB: loop body
LE: loop exit
PB: predicated region body
PF: predicated region fallthrough
CT: control target
= control target key end

     0   :  { %s1766_s0 = inlined_call_operand.hbm [shape: bf16[32,32], index: 0, kind: input, shape index: {}]   ;;  %s1767_s1 = inlined_call_operand.hbm [shape: bf16[32,32], index: 1, kind: input, shape index: {}]   ;;  %s1768_s2 = inlined_call_operand.hbm [shape: bf16[32,32], index: 2, kind: input, shape index: {}]   ;;  %s1769_s3 = inlined_call_operand.hbm [shape: bf16[32,32], index: 3, kind: input, shape index: {}]   ;;  %s1770_s4 = inlined_call_operand.vmem [shape: f32[1,32], index: 4, kind: input, shape index: {}]   ;;  %s1771_s5 = inlined_call_operand.vmem [shape: f32[1,32], index: 5, kind: input, shape index: {}]   ;;  %s1772_s6 = inlined_call_operand.vmem [shape: f32[1,32], index: 6, kind: input, shape index: {}]   ;;  %s1773_s7 = inlined_call_operand.hbm [shape: bf16[32,32], index: 7, kind: output, shape index: {0}]   ;;  %s1774_s8 = inlined_call_operand.hbm [shape: bf16[32,32], index: 8, kind: output, shape index: {1}]   ;;  %s1775_s9 = inlined_call_operand.hbm [shape: bf16[32,32], index: 9, kind: output, shape index: {2}]  }
   0x1   :  { %1783 = sst [smem:[#allocation21_spill]] %s1766_s0 }
   0x2   :  { %1784 = sst [smem:[#allocation22_spill]] %s1775_s9 }
   0x3   :  { %15 = vsyncpa [#allocation3], 0 }
   0x4   :  { %17 = vsyncpa [#allocation3 + $0x1], 0 }
   0x5   :  { %18 = vsyncpa [#allocation6], 0 }
   0x6   :  { %19 = vsyncpa [#allocation9], 0 }
   0x7   :  { %20 = vsyncpa [#allocation4], 0 }
   0x8   :  { %22 = vsyncpa [#allocation4 + $0x1], 0 }
   0x9   :  { %23 = vsyncpa [#allocation12], 0 }
   0xa   :  { %25 = vsyncpa [#allocation12 + $0x1], 0  ;;  %s1374_s30 = smov 0   ;;  %s1376_s10 = smov 0  }
   0xb   :  { %s1378_s11 = smov 0   ;;  %s1380_s12 = smov 0  }
   0xc LB: > { %1785 = sst [smem:[#allocation19_spill]] %s1297_s30  ;;  %s1395_s13 = sadd.s32 4294967295, %s1309_s12   ;;  %s1309_s12 = sphi %s1380_s12, %s1813_s12   ;;  %s1305_s11 = sphi %s1378_s11, %s1812_s11   ;;  %s1301_s10 = sphi %s1376_s10, %s1811_s10   ;;  %s1297_s30 = sphi %s1374_s30, %s1810_s30  }
   0xd   : > { %s1777_s14 = sadd.s32 4294967294, %s1309_s12   ;;  %p51_p0 = scmp.ne.s32.totalorder %s1301_s10, %s1297_s30 }
   0xe   : > { %p1776_p1 = scmp.eq.s32.totalorder %s1395_s13, 0  ;;  %p207_p3 = scmp.eq.s32.totalorder %s1777_s14, 1 }
   0xf   : > { %p872_p5 = scmp.ge.s32.totalorder %s1309_s12, 1  ;;  %p266_p7 = scmp.lt.s32.totalorder %s1309_s12, 3 }
  0x10   : > { %p1406_p4 = por %p1776_p1, %p51_p0  ;;  %p1411_p6 = por %p207_p3, %p51_p0 }
  0x11   : > { %p1416_p8 = pnand %p872_p5, %p266_p7  ;;  %s1311_s18 = smov [#allocation5]  }
  0x12   : > { %s1786_s15 = scalar_select %p1406_p4, 1, 0 }
  0x13   : > { %s1787_s16 = scalar_select %p1411_p6, 1, 0 }
  0x14   : > { %s1789_s17 = scalar_select %p1416_p8, 1, 0 }
  0x15   : > { %1788 = sst [smem:[#allocation20_spill]] %s1787_s16  ;;  %s278_s19 = sshll.u32 %s1311_s18, 4  ;;  %s1420_s19 = int_to_ptr.vmem [resolvable:$true] %s278_s19 }
  0x16   : > { %p981_p9 = pneg %p1416_p8  ;;  %s1312_s21 = smov [#allocation7]  }
  0x17   : > { %s291_s22 = sshll.u32 %s1312_s21, 4  ;;  %s1313_s23 = smov [#allocation8]   ;;  %s1431_s22 = int_to_ptr.vmem [resolvable:$true] %s291_s22 }
  0x18   : > { %p1427_p11 = pnand %p981_p9, %p1776_p1  ;;  %s1433_s24 = sshll.u32 %s1313_s23, 4  ;;  %s305_s24 = int_to_ptr.vmem [resolvable:$true] %s1433_s24 }
  0x19   : > { %s1061_s27 = scalar_lea.hbm %s1767_s1, 256 }
  0x1a   : > { %p1062_p12 = scmp.ne.s32.totalorder %s1767_s1, %s1061_s27  ;;  %p1443_p13 = pneg %p1427_p11 }
  0x1b   : > { %p1068_p5 = scmp.lt.u32.totalorder %s1061_s27, %s1767_s1 }
  0x1c   : > { %p1064_p0 = pnand %p1443_p13, %p1062_p12 }
  0x1e   : > { %p1065_p3 = pneg %p1064_p0 }
  0x20   : > { %p1070_p7 = pnand %p1068_p5, %p1065_p3 }
  0x22   : > { %1073 = shalt.err (!%p1070_p7)
}
  0x23   : > { %s1074_s25 = scalar_lea.vmem %s1420_s19, 256  ;;  %p1082_p2 = scmp.lt.s32.totalorder %s1420_s19, %s1420_s19 }
  0x24   : > { %p1075_p9 = scmp.ne.s32.totalorder %s1420_s19, %s1074_s25  ;;  %p1083_p6 = scmp.lt.s32.totalorder %s1074_s25, %s1074_s25 }
  0x26   : > { %p1077_p10 = pnand %p1075_p9, %p1443_p13  ;;  %p1084_p12 = por %p1083_p6, %p1082_p2 }
  0x28   : > { %p1078_p1 = pneg %p1077_p10 }
  0x2a   : > { %p1085_p0 = pnand %p1084_p12, %p1078_p1 }
  0x2c   : > { %1088 = shalt.err (!%p1085_p0)
}
  0x2d   : > { %s1314_s26 = smov 64   ;;  %s1315_s27 = smov 4  }
  0x2e   : > { %984 = dma.hbm_to_vmem [thread:$0]  (!%p1427_p11), %s1767_s1, 256, %s1420_s19, [#allocation6], %s1314_s26, %s1314_s26, %s1315_s27  }
  0x2f   : > { %s1089_s25 = scalar_lea.hbm %s1768_s2, 256 }
  0x30   : > { %p1090_p1 = scmp.ne.s32.totalorder %s1768_s2, %s1089_s25  ;;  %p1096_p10 = scmp.lt.u32.totalorder %s1089_s25, %s1768_s2 }
  0x32   : > { %p1092_p2 = pnand %p1090_p1, %p1443_p13 }
  0x34   : > { %p1093_p6 = pneg %p1092_p2 }
  0x36   : > { %p1098_p3 = pnand %p1096_p10, %p1093_p6 }
  0x38   : > { %1101 = shalt.err (!%p1098_p3)
}
  0x39   : > { %s1102_s19 = scalar_lea.vmem %s1431_s22, 256  ;;  %p1110_p12 = scmp.lt.s32.totalorder %s1431_s22, %s1431_s22 }
  0x3a   : > { %p1103_p5 = scmp.ne.s32.totalorder %s1431_s22, %s1102_s19  ;;  %p1111_p0 = scmp.lt.s32.totalorder %s1102_s19, %s1102_s19 }
  0x3c   : > { %p1105_p7 = pnand %p1103_p5, %p1443_p13  ;;  %p1112_p1 = por %p1111_p0, %p1110_p12 }
  0x3e   : > { %p1106_p9 = pneg %p1105_p7 }
  0x40   : > { %p1113_p2 = pnand %p1112_p1, %p1106_p9 }
  0x42   : > { %1116 = shalt.err (!%p1113_p2)
}
  0x43   : > { %987 = dma.hbm_to_vmem [thread:$0]  (!%p1427_p11), %s1768_s2, 256, %s1431_s22, [#allocation6], %s1314_s26, %s1314_s26, %s1315_s27  }
  0x44   : > { %s1117_s28 = scalar_lea.hbm %s1769_s3, 256 }
  0x45   : > { %p1118_p6 = scmp.ne.s32.totalorder %s1769_s3, %s1117_s28  ;;  %p1124_p5 = scmp.lt.u32.totalorder %s1117_s28, %s1769_s3 }
  0x47   : > { %p1120_p10 = pnand %p1118_p6, %p1443_p13 }
  0x49   : > { %p1121_p3 = pneg %p1120_p10 }
  0x4b   : > { %p1126_p7 = pnand %p1124_p5, %p1121_p3 }
  0x4d   : > { %1129 = shalt.err (!%p1126_p7)
}
  0x4e   : > { %s1130_s19 = scalar_lea.vmem %s305_s24, 256  ;;  %p1138_p1 = scmp.lt.s32.totalorder %s305_s24, %s305_s24 }
  0x4f   : > { %p1131_p9 = scmp.ne.s32.totalorder %s305_s24, %s1130_s19  ;;  %p1139_p2 = scmp.lt.s32.totalorder %s1130_s19, %s1130_s19 }
  0x51   : > { %p1133_p12 = pnand %p1131_p9, %p1443_p13  ;;  %p1140_p4 = por %p1139_p2, %p1138_p1 }
  0x53   : > { %p1134_p0 = pneg %p1133_p12 }
  0x55   : > { %p1141_p8 = pnand %p1140_p4, %p1134_p0 }
  0x57   : > { %1144 = shalt.err (!%p1141_p8)
}
  0x58   : > { %990 = dma.hbm_to_vmem [thread:$0]  (!%p1427_p11), %s1769_s3, 256, %s305_s24, [#allocation9], %s1314_s26, %s1314_s26, %s1315_s27  }
  0x59   : > { %s1516_s18 = sadd.s32 1, %s1309_s12   ;;  %s38_s30 = sadd.s32 1, %s1305_s11 }
  0x5a   : > { %s35_s20 = ssub.s32 %s1309_s12, %s1516_s18  ;;  %p45_p8 = scmp.ne.s32.totalorder %s1305_s11, %s1301_s10 }
  0x5b   : > { %p36_p4 = scmp.eq.s32.totalorder %s35_s20, 0  ;;  %p46_p13 = scmp.eq.s32.totalorder %s1309_s12, 0 }
  0x5c   : > { %p1008_p6 = scmp.lt.s32.totalorder %s1309_s12, 2  ;;  %p1792_p3 = scmp.eq.s32.totalorder %s1395_s13, 1 }
  0x5d   : > { %s1526_s14 = scalar_select %p36_p4, %s1305_s11, %s38_s30  }
  0x5e   : > { %p47_p10 = por %p46_p13, %p45_p8  ;;  %p1530_p5 = por %p1792_p3, %p45_p8 }
  0x5f   : > { %s327_s28 = sand.u32 1, %s1305_s11   ;;  %s918_s29 = sshll.u32 %s1309_s12, 7 }
  0x60   : > { %s877_s24 = sshll.u32 %s327_s28, 3  ;;  %s1794_s0 = sld [smem:[#allocation21_spill]] }
  0x61   : > { %s331_s19 = scalar_lea.vmem [#allocation2], %s877_s24  ;;  %p1541_p11 = pnand %p1008_p6, %p47_p10 }
  0x62   : > { %s338_s22 = sshll.u32 %s331_s19, 4  ;;  %s1547_s20 = scalar_lea.sflag [#allocation3], %s327_s28  ;;  %s1545_s22 = int_to_ptr.vmem [resolvable:$true] %s338_s22 }
  0x63   : > { %p1147_p9 = pneg %p1541_p11 }
  0x66   : > { %s1539_s25 = scalar_lea.hbm %s1794_s0, %s918_s29  ;;  %s1150_s21 = scalar_lea.hbm %s1794_s0, 256 }
  0x67   : > { %s1145_s30 = scalar_lea.hbm %s1539_s25, 128  ;;  %p1151_p1 = scmp.lt.u32.totalorder %s1539_s25, %s1794_s0 }
  0x68   : > { %p1146_p7 = scmp.ne.s32.totalorder %s1539_s25, %s1145_s30  ;;  %p1152_p2 = scmp.lt.u32.totalorder %s1150_s21, %s1145_s30 }
  0x69   : > { %p1154_p8 = scmp.lt.u32.totalorder %s1145_s30, %s1539_s25 }
  0x6a   : > { %p1148_p12 = pnand %p1147_p9, %p1146_p7  ;;  %p1153_p4 = por %p1152_p2, %p1151_p1 }
  0x6c   : > { %p1149_p0 = pneg %p1148_p12  ;;  %p1155_p13 = por %p1154_p8, %p1153_p4 }
  0x6e   : > { %p1156_p6 = pnand %p1155_p13, %p1149_p0 }
  0x70   : > { %1159 = shalt.err (!%p1156_p6)
}
  0x71   : > { %s1160_s28 = scalar_lea.vmem %s1545_s22, 128  ;;  %s1316_s29 = smov [#allocation2]  }
  0x72   : > { %p1161_p10 = scmp.ne.s32.totalorder %s1545_s22, %s1160_s28  ;;  %s1165_s24 = sshll.u32 %s1316_s29, 4  ;;  %s1166_s24 = int_to_ptr.vmem [resolvable:$false] %s1165_s24 }
  0x73   : > { %s1167_s23 = scalar_lea.vmem %s1166_s24, 256  ;;  %p1168_p12 = scmp.lt.s32.totalorder %s1545_s22, %s1166_s24 }
  0x74   : > { %p1163_p3 = pnand %p1161_p10, %p1147_p9  ;;  %p1169_p1 = scmp.lt.s32.totalorder %s1167_s23, %s1160_s28 }
  0x76   : > { %p1164_p7 = pneg %p1163_p3  ;;  %p1170_p2 = por %p1169_p1, %p1168_p12 }
  0x78   : > { %p1171_p4 = pnand %p1170_p2, %p1164_p7 }
  0x7a   : > { %1174 = shalt.err (!%p1171_p4)
}
  0x7b   : > { %994 = dma.hbm_to_vmem [thread:$0]  (!%p1541_p11), %s1539_s25, 128, %s1545_s22, %s1547_s20, %s1314_s26, %s1314_s26, %s1315_s27  }
  0x7c   : > { %p1796_p9 = scmp.ne.s32.totalorder %s1789_s17, 0 }
  0x7d   : > { %s1581_s30 = sand.u32 (!%p1796_p9), 1, %s1301_s10   ;;  %p1797_p0 = scmp.ne.s32.totalorder (!%p1796_p9), %s1786_s15, 0 }
  0x7e   : > { %350 = sbr.rel (%p1796_p9) target bundleno = 438 (0x1b6), region = 48  ;;  %s1584_s21 = sshll.u32 (!%p1796_p9), %s1581_s30, 3 }
  0x7f   : > { %s353_s9 = scalar_lea.sflag (!%p1796_p9), [#allocation3], %s1581_s30  ;;  %s356_s19 = scalar_lea.vmem (!%p1796_p9), [#allocation2], %s1584_s21 }
  0x85   : > { %1276 = dma.done.wait (%p1797_p0), %s353_s9, 128  }
  0x86   : > { %1278 = vsyncadd (%p1797_p0), %s353_s9, 4294967168  ;;  %p1798_p11 = scmp.eq.s32.totalorder %s1395_s13, 0 }
  0x88   : > { %1280 = dma.done.wait (%p1798_p11), [#allocation6], 512   ;;  %p1799_p8 = pmov %p1798_p11 }
  0x8a   : > { %1282 = vsyncadd (%p1799_p8), [#allocation6], 4294966784  ;;  %p1800_p13 = pmov %p1799_p8 }
  0x8b   : > { %p1801_p6 = pmov %p1799_p8 }
  0x8c   : > { %1284 = dma.done.wait (%p1800_p13), [#allocation9], 256  }
  0x8d   : > { %1286 = vsyncadd (%p1801_p6), [#allocation9], 4294967040  ;;  %v1317_v0 = vmov 0.0   ;;  %vm1318_vm0 = vmmov 0   ;;  %v1054_v1 = vld [vmem:[#allocation5] sm:$0xff]   ;;  %v1055_v2 = vld [vmem:[#allocation5 + $0x8] sm:$0xff]  }
  0x8e   : > { %937 = vmatprep.subr.bf16.mxu0 %v1317_v0  ;;  %945 = vmatprep.subr.bf16.mxu1 %v1317_v0  ;;  %v1056_v3 = vld [vmem:[#allocation7] sm:$0xff]   ;;  %v1059_v5 = vld [vmem:[#allocation7 + $0x8] sm:$0xff]   ;;  %vm448_vm1 = vcmask 261120   ;;  %v1058_v6 = vld [vmem:[#allocation8] sm:$0xff]   ;;  %s398_s25 = scalar_lea.vmem [#allocation10], %s1584_s21  ;;  %vm501_vm2 = vcmask 257024  }
  0x8f   : > { %941 = vmatprep.mubr.msk.bf16.mxu0 %vm1318_vm0, %v1317_v0  ;;  %949 = vmatprep.mubr.msk.bf16.mxu1 %vm1318_vm0, %v1317_v0  ;;  %v1057_v4 = vld [vmem:[%s356_s19] sm:$0xff]   ;;  %v1060_v7 = vld [vmem:[#allocation8 + $0x8] sm:$0xff]   ;;  %s676_s22 = sshll.u32 %s398_s25, 4  ;;  %s1611_s20 = scalar_lea.vmem [#allocation11], %s1584_s21  ;;  %s1625_s22 = int_to_ptr.vmem [resolvable:$true] %s676_s22 }
  0x90   : > { %938 = vmatpush3.bf16.msra.mxu0 %v1054_v1  ;;  %946 = vmatpush3.bf16.msra.mxu1 %v1056_v3  ;;  %v888_v8 = vld [vmem:[%s1770_s4] ss:$0 sm:$0xff]  ;;  %s692_s28 = sshll.u32 %s1611_s20, 4  ;;  %s1615_s29 = sshll.u32 %s1395_s13, 7  ;;  %s1641_s28 = int_to_ptr.vmem [resolvable:$true] %s692_s28 }
  0x91   : > { %939 = vmatprep.subr.bf16.mxu0 %v1317_v0  ;;  %947 = vmatprep.subr.bf16.mxu1 %v1317_v0  ;;  %v895_v10 = vld [vmem:[%s1771_s5] ss:$0 sm:$0xff]  ;;  %s1623_s19 = scalar_lea.hbm %s1773_s7, %s1615_s29  ;;  %s1639_s23 = scalar_lea.hbm %s1774_s8, %s1615_s29 }
  0x92   : > { %v1630_v25 = vld [vmem:[%s1772_s6] ss:$0 sm:$0xff]  ;;  %s1175_s15 = scalar_lea.vmem %s1625_s22, 128  ;;  %s1319_s17 = smov [#allocation10]  }
  0x93   : > { %p1176_p10 = scmp.ne.s32.totalorder %s1625_s22, %s1175_s15  ;;  %s1179_s24 = sshll.u32 %s1319_s17, 4  ;;  %s1180_s24 = int_to_ptr.vmem [resolvable:$false] %s1179_s24 }
  0x94   : > { %940 = vmatpush3.bf16.msra.mxu0 %v1055_v2  ;;  %948 = vmatpush3.bf16.msra.mxu1 %v1059_v5  ;;  %p1182_p12 = scmp.lt.s32.totalorder %s1625_s22, %s1180_s24 }
  0x95   : > { %953 = vmatprep.subr.bf16.mxu0 %v1317_v0  ;;  %p1177_p3 = pnand %p1176_p10, %p1530_p5 }
  0x97   : > { %942 = vmatmul.mubr.msk.bf16.vlgmr.msra.gmra.mrb[0].mxu0 %vm448_vm1, %v1057_v4  ;;  %950 = vmatmul.mubr.msk.bf16.vlgmr.msra.gmra.mrb[0].mxu1 %vm448_vm1, %v1057_v4  ;;  %p1178_p7 = pneg %p1177_p3 }
  0x98   : > { %954 = vmatpush3.bf16.msra.mxu0 %v1058_v6  ;;  %957 = vmatprep.mubr.msk.bf16.mxu0 %vm1318_vm0, %v1317_v0 }
  0x99   : > { %955 = vmatprep.subr.bf16.mxu0 %v1317_v0 }
  0x9c   : > { %956 = vmatpush3.bf16.msra.mxu0 %v1060_v7 }
  0x9f   : > { %958 = vmatmul.mubr.msk.bf16.vlgmr.msra.gmra.mrb[4].mxu0 %vm448_vm1, %v1057_v4 }
 0x16a   : > { %v486_v9 = vpop.f32.mrb[0].mxu0  ;;  %v561_v14 = vpop.f32.mrb[0].mxu1 }
 0x16b   : > { %v487_v11 = vadd.f32 %v888_v8, %v486_v9  ;;  %v943_v12 = vpop.f32.mrb[1].mxu0  ;;  %v562_v18 = vadd.f32 %v895_v10, %v561_v14  ;;  %v951_v19 = vpop.f32.mrb[1].mxu1 }
 0x16c   : > { %v489_v13 = vpop.f32.mrb[2].mxu0  ;;  %v564_v20 = vpop.f32.mrb[2].mxu1 }
 0x16d   : > { %v919_v15 = vpack.c.bf16 %v487_v11, %v487_v11  ;;  %v490_v16 = vadd.f32 %v888_v8, %v489_v13  ;;  %v944_v17 = vpop.f32.mrb[3].mxu0  ;;  %v921_v22 = vpack.c.bf16 %v562_v18, %v562_v18  ;;  %v565_v23 = vadd.f32 %v895_v10, %v564_v20  ;;  %v952_v24 = vpop.f32.mrb[3].mxu1 }
 0x16f   : > { %502 = vst.msk [vmem:[%s398_s25] sm:$0xf] %vm501_vm2, %v919_v15  ;;  %v920_v21 = vpack.c.bf16 %v490_v16, %v490_v16  ;;  %576 = vst.msk [vmem:[%s1611_s20] sm:$0xf] %vm501_vm2, %v921_v22  ;;  %v922_v26 = vpack.c.bf16 %v565_v23, %v565_v23 }
 0x171   : > { %503 = vst.msk [vmem:[%s398_s25 + $0x4] sm:$0xf] %vm501_vm2, %v920_v21  ;;  %s1181_s25 = scalar_lea.vmem %s1180_s24, 256 }
 0x172   : > { %v635_v27 = vpop.f32.mrb[4].mxu0  ;;  %p1183_p1 = scmp.lt.s32.totalorder %s1181_s25, %s1175_s15 }
 0x174   : > { %p1184_p2 = por %p1183_p1, %p1182_p12 }
 0x176   : > { %p1185_p4 = pnand %p1184_p2, %p1178_p7 }
 0x178   : > { %1188 = shalt.err (!%p1185_p4)
}
 0x179   : > { %s1189_s26 = scalar_lea.hbm %s1623_s19, 128  ;;  %s1193_s17 = scalar_lea.hbm %s1773_s7, 256 }
 0x17a   : > { %p1190_p9 = scmp.ne.s32.totalorder %s1623_s19, %s1189_s26  ;;  %p1194_p8 = scmp.lt.u32.totalorder %s1623_s19, %s1773_s7 }
 0x17b   : > { %p1195_p13 = scmp.lt.u32.totalorder %s1193_s17, %s1189_s26  ;;  %p1197_p10 = scmp.lt.u32.totalorder %s1189_s26, %s1623_s19 }
 0x17c   : > { %p1191_p0 = pnand %p1190_p9, %p1530_p5 }
 0x17d   : > { %p1196_p6 = por %p1195_p13, %p1194_p8 }
 0x17e   : > { %p1192_p11 = pneg %p1191_p0 }
 0x17f   : > { %p1198_p3 = por %p1197_p10, %p1196_p6 }
 0x181   : > { %p1199_p7 = pnand %p1198_p3, %p1192_p11 }
 0x183   : > { %1202 = shalt.err (!%p1199_p7)
}
 0x184   : > { %s1320_s15 = smov 64   ;;  %s1321_s9 = smov 4   ;;  %577 = vst.msk [vmem:[%s1611_s20 + $0x4] sm:$0xf] %vm501_vm2, %v922_v26  ;;  %v636_v28 = vadd.f32 %v1630_v25, %v635_v27  ;;  %v959_v29 = vpop.f32.mrb[5].mxu0 }
 0x185   : > { %s1802_s0 = scalar_lea.sflag [#allocation4], %s1581_s30  ;;  %s1674_s25 = scalar_lea.vmem [#allocation13], %s1584_s21  ;;  %v638_v30 = vpop.f32.mrb[6].mxu0 }
 0x186   : > { %975 = dma.vmem_to_hbm [thread:$0]  (%p1530_p5), %s1625_s22, 128, %s1623_s19, %s1802_s0, %s1320_s15, %s1320_s15, %s1321_s9  }
 0x187   : > { %s708_s26 = sshll.u32 %s1674_s25, 4  ;;  %s1803_s27 = sand.u32 1, %s1395_s13   ;;  %s1711_s26 = int_to_ptr.vmem [resolvable:$true] %s708_s26 }
 0x188   : > { %s1679_s17 = scalar_lea.sflag [#allocation12], %s1803_s27  ;;  %s1203_s24 = scalar_lea.vmem %s1641_s28, 128 }
 0x189   : > { %p1204_p12 = scmp.ne.s32.totalorder %s1641_s28, %s1203_s24  ;;  %s1322_s30 = smov [#allocation11]  }
 0x18a   : > { %s1207_s22 = sshll.u32 %s1322_s30, 4  ;;  %s1208_s22 = int_to_ptr.vmem [resolvable:$false] %s1207_s22 }
 0x18b   : > { %p1205_p1 = pnand %p1204_p12, %p1530_p5  ;;  %s1209_s20 = scalar_lea.vmem %s1208_s22, 256 }
 0x18c   : > { %p1210_p4 = scmp.lt.s32.totalorder %s1641_s28, %s1208_s22  ;;  %p1211_p9 = scmp.lt.s32.totalorder %s1209_s20, %s1203_s24 }
 0x18d   : > { %p1206_p2 = pneg %p1205_p1 }
 0x18e   : > { %p1212_p0 = por %p1211_p9, %p1210_p4 }
 0x190   : > { %p1213_p11 = pnand %p1212_p0, %p1206_p2 }
 0x192   : > { %1216 = shalt.err (!%p1213_p11)
}
 0x193   : > { %s1217_s13 = scalar_lea.hbm %s1639_s23, 128  ;;  %s1221_s0 = scalar_lea.hbm %s1774_s8, 256 }
 0x194   : > { %p1218_p8 = scmp.ne.s32.totalorder %s1639_s23, %s1217_s13  ;;  %p1222_p10 = scmp.lt.u32.totalorder %s1639_s23, %s1774_s8 }
 0x195   : > { %p1223_p3 = scmp.lt.u32.totalorder %s1221_s0, %s1217_s13  ;;  %p1225_p12 = scmp.lt.u32.totalorder %s1217_s13, %s1639_s23 }
 0x196   : > { %p1219_p13 = pnand %p1218_p8, %p1530_p5 }
 0x197   : > { %p1224_p7 = por %p1223_p3, %p1222_p10 }
 0x198   : > { %p1220_p6 = pneg %p1219_p13 }
 0x199   : > { %p1226_p1 = por %p1225_p12, %p1224_p7 }
 0x19b   : > { %p1227_p2 = pnand %p1226_p1, %p1220_p6 }
 0x19d   : > { %1230 = shalt.err (!%p1227_p2)
}
 0x19e   : > { %976 = dma.vmem_to_hbm [thread:$0]  (%p1530_p5), %s1641_s28, 128, %s1639_s23, %s1679_s17, %s1320_s15, %s1320_s15, %s1321_s9   ;;  %v923_v31 = vpack.c.bf16 %v636_v28, %v636_v28  ;;  %v639_v32 = vadd.f32 %v1630_v25, %v638_v30  ;;  %v960_v33 = vpop.f32.mrb[7].mxu0 }
 0x19f   : > { %s1804_s20 = sld [smem:[#allocation22_spill]]  ;;  %s1231_s28 = scalar_lea.vmem %s1711_s26, 128 }
 0x1a0   : > { %650 = vst.msk [vmem:[%s1674_s25] sm:$0xf] %vm501_vm2, %v923_v31  ;;  %v924_v34 = vpack.c.bf16 %v639_v32, %v639_v32  ;;  %p1232_p4 = scmp.ne.s32.totalorder %s1711_s26, %s1231_s28  ;;  %s1323_s23 = smov [#allocation13]  }
 0x1a1   : > { %s1235_s21 = sshll.u32 %s1323_s23, 4  ;;  %s1236_s21 = int_to_ptr.vmem [resolvable:$false] %s1235_s21 }
 0x1a2   : > { %651 = vst.msk [vmem:[%s1674_s25 + $0x4] sm:$0xf] %vm501_vm2, %v924_v34  ;;  %p1233_p9 = pnand %p1232_p4, %p1530_p5  ;;  %s1237_s19 = scalar_lea.vmem %s1236_s21, 256 }
 0x1a3   : > { %p1238_p11 = scmp.lt.s32.totalorder %s1711_s26, %s1236_s21  ;;  %p1239_p8 = scmp.lt.s32.totalorder %s1237_s19, %s1231_s28 }
 0x1a4   : > { %p1234_p0 = pneg %p1233_p9 }
 0x1a5   : > { %s1717_s13 = scalar_lea.hbm %s1804_s20, %s1615_s29  ;;  %p1240_p13 = por %p1239_p8, %p1238_p11 }
 0x1a7   : > { %p1241_p6 = pnand %p1240_p13, %p1234_p0 }
 0x1a9   : > { %1244 = shalt.err (!%p1241_p6)
}
 0x1aa   : > { %s1245_s29 = scalar_lea.hbm %s1717_s13, 128  ;;  %s1249_s27 = scalar_lea.hbm %s1804_s20, 256 }
 0x1ab   : > { %p1246_p10 = scmp.ne.s32.totalorder %s1717_s13, %s1245_s29  ;;  %p1250_p12 = scmp.lt.u32.totalorder %s1717_s13, %s1804_s20 }
 0x1ac   : > { %p1251_p1 = scmp.lt.u32.totalorder %s1249_s27, %s1245_s29  ;;  %p1253_p4 = scmp.lt.u32.totalorder %s1245_s29, %s1717_s13 }
 0x1ad   : > { %p1247_p3 = pnand %p1246_p10, %p1530_p5 }
 0x1ae   : > { %p1252_p2 = por %p1251_p1, %p1250_p12 }
 0x1af   : > { %p1248_p7 = pneg %p1247_p3 }
 0x1b0   : > { %p1254_p9 = por %p1253_p4, %p1252_p2 }
 0x1b2   : > { %p1255_p0 = pnand %p1254_p9, %p1248_p7 }
 0x1b4   : > { %1258 = shalt.err (!%p1255_p0)
}
 0x1b5   : > { %977 = dma.vmem_to_hbm [thread:$0]  (%p1530_p5), %s1711_s26, 128, %s1717_s13, %s1679_s17, %s1320_s15, %s1320_s15, %s1321_s9  }
 0x1b6 PF: > { %s1805_s22 = sld [smem:[#allocation19_spill]]  ;;  %s1806_s28 = sld [smem:[#allocation20_spill]] }
 0x1b7   : > { %p1808_p8 = scmp.ge.s32.totalorder %s1309_s12, 2 }
 0x1bc   : > { %s723_s23 = sand.u32 1, %s1805_s22   ;;  %p1807_p11 = scmp.ne.s32.totalorder %s1806_s28, 0 }
 0x1bd   : > { %s724_s21 = scalar_lea.sflag [#allocation4], %s723_s23 }
 0x1be   : > { %p996_p13 = pnand %p1808_p8, %p1807_p11 }
 0x1c0   : > { %1288 = dma.done.wait (!%p996_p13), %s724_s21, 128  }
 0x1c1   : > { %1290 = vsyncadd (!%p996_p13), %s724_s21, 4294967168  ;;  %s1809_s16 = sadd.s32 4294967294, %s1309_s12  }
 0x1c2   : > { %s732_s19 = sand.u32 1, %s1809_s16  }
 0x1c3   : > { %s733_s29 = scalar_lea.sflag [#allocation12], %s732_s19 }
 0x1c4   : > { %1292 = dma.done.wait (!%p996_p13), %s733_s29, 256  }
 0x1c5   : > { %1294 = vsyncadd (!%p996_p13), %s733_s29, 4294967040  ;;  %p28_p5 = scmp.ge.s32.totalorder %s1516_s18, 4   ;;  %s1810_s30 = smov %s1301_s10 }
 0x1c6   : > { %s1811_s10 = smov %s1305_s11  ;;  %s1812_s11 = smov %s1526_s14 }
 0x1c7   : > { %s1813_s12 = smov %s1516_s18  ;;  %30 = sbr.rel (!%p28_p5) target bundleno = 12 (0xc), region = 137 }
 0x1ce   :  { %747 = vsyncpa [#allocation3], 1 }
 0x1cf   :  { %749 = vsyncpa [#allocation3 + $0x1], 1 }
 0x1d0   :  { %750 = vsyncpa [#allocation6], 1 }
 0x1d1   :  { %751 = vsyncpa [#allocation9], 1 }
 0x1d2   :  { %752 = vsyncpa [#allocation4], 1 }
 0x1d3   :  { %754 = vsyncpa [#allocation4 + $0x1], 1 }
 0x1d4   :  { %755 = vsyncpa [#allocation12], 1 }
 0x1d5   :  { %757 = vsyncpa [#allocation12 + $0x1], 1 }

</bundles_post_ra>
